<compile_context>
chip_gen: v7x
topology: tpu7x:2x2x1
jax: 0.10.0
libtpu: 0.0.40
codegen_flags: <defaults>
</compile_context>

<pallas_src>
import functools

import jax
import jax.numpy as jnp
from jax.experimental import pallas as pl
from jax.experimental.pallas import tpu as pltpu

EPS = 1e-5  # nn.InstanceNorm2d default eps

# ~6 MiB of f32-equivalent x-block per grid step (review: 6-8 MiB is safe on
# v7x's 64 MiB VMEM and large enough on v5e/v6e).
_TARGET_BLOCK_ELEMS = (6 * 1024 * 1024) // 4
# Hard per-block ceiling (~8 MiB f32); above this we use the chunked-HW path.
_MAX_BLOCK_ELEMS = 2 * 1024 * 1024
# Never request more scoped VMEM than this (v7x has 64 MiB/TC total).
_VMEM_LIMIT_CAP = 48 * 1024 * 1024


def _round_up(v, m):
    return ((v + m - 1) // m) * m


def _vmem_limit(block_io_bytes, intermediates=0):
    needed = 2 * block_io_bytes + intermediates + (2 << 20)
    return int(min(_VMEM_LIMIT_CAP, max(needed, 16 << 20)))


def _pick_block_rows(rows, hw_p):
    """Row tile: multiple of 8 (or the full row extent), ~_TARGET_BLOCK_ELEMS."""
    max_rows = max(1, _TARGET_BLOCK_ELEMS // hw_p)
    if rows >= 16:
        # Keep >= 2 grid steps so the "parallel" row axis can shard across both
        # TensorCores on v7x (single grid step would idle half the chip).
        max_rows = min(max_rows, rows // 2)
    if rows <= max_rows:
        return rows
    tr = max(8, (max_rows // 8) * 8)
    # Prefer a divisor of `rows` (no padded edge block), but don't shrink the
    # tile below half of the target.
    for cand in range(tr, 7, -8):
        if cand * 2 < tr:
            break
        if rows % cand == 0:
            return cand
    return tr


# ---------------------------------------------------------------------------
# Kernels
# ---------------------------------------------------------------------------
def _fused_kernel(x_ref, ss_ref, o_ref, *, inv_hw):
    # x_ref: (tr, HWp)   ss_ref: (tr, 2) = [fused scale, fused shift]
    # One-pass stats in f32 over the lane (spatial) axis.  Zero-padded lanes
    # contribute nothing to sum / sum-of-squares, so dividing by the true H*W
    # gives exact statistics.
    x32 = x_ref[...].astype(jnp.float32)
    s = jnp.sum(x32, axis=-1, keepdims=True)
    ssq = jnp.sum(x32 * x32, axis=-1, keepdims=True)
    mean = s * inv_hw
    # NOTE: one-pass variance (clamped >= 0); can lose precision vs the
    # two-pass form when |mean| >> std.
    var = jnp.maximum(ssq * inv_hw - mean * mean, 0.0)
    rstd = jax.lax.rsqrt(var + EPS)

    ss = ss_ref[...]
    a = ss[:, 0:1] * rstd          # (tr, 1) f32
    b = ss[:, 1:2] - a * mean      # (tr, 1) f32

    # Apply the affine directly on the original-dtype tile: no whole-tile f32
    # intermediate is kept live, and bf16 inputs get a bf16 elementwise tail.
    xd = x_ref[...]
    o_ref[...] = (xd * a.astype(xd.dtype) + b.astype(xd.dtype)).astype(o_ref.dtype)


def _stats_kernel(x_ref, sum_ref, ssq_ref):
    # Accumulate per-row sum / sum-of-squares across HW chunks (axis 1).
    @pl.when(pl.program_id(1) == 0)
    def _():
        sum_ref[...] = jnp.zeros_like(sum_ref)
        ssq_ref[...] = jnp.zeros_like(ssq_ref)

    x32 = x_ref[...].astype(jnp.float32)
    sum_ref[...] += jnp.sum(x32, axis=-1, keepdims=True)
    ssq_ref[...] += jnp.sum(x32 * x32, axis=-1, keepdims=True)


def _apply_kernel(x_ref, ab_ref, o_ref):
    xd = x_ref[...]
    ab = ab_ref[...]
    a = ab[:, 0:1].astype(xd.dtype)
    b = ab[:, 1:2].astype(xd.dtype)
    o_ref[...] = (xd * a + b).astype(o_ref.dtype)


# ---------------------------------------------------------------------------
# Paths
# ---------------------------------------------------------------------------
def _run_fused(x_flat, scale_shift, hw, out_dtype):
    """Single-pass path: the whole (padded) spatial plane fits in one block."""
    rows = x_flat.shape[0]
    itemsize = x_flat.dtype.itemsize

    hw_p = _round_up(hw, 128)
    if hw_p != hw:
        x_flat = jnp.pad(x_flat, ((0, 0), (0, hw_p - hw)))

    tr = _pick_block_rows(rows, hw_p)
    grid = (pl.cdiv(rows, tr),)

    blk_io = 2 * tr * hw_p * itemsize              # x block in + out block
    inter = (3 * tr * hw_p * 4) // 2               # ~1.5 f32 tiles of temps

    out = pl.pallas_call(
        functools.partial(_fused_kernel, inv_hw=1.0 / hw),
        out_shape=jax.ShapeDtypeStruct((rows, hw_p), out_dtype),
        grid_spec=pltpu.PrefetchScalarGridSpec(
            num_scalar_prefetch=0,
            grid=grid,
            in_specs=[
                pl.BlockSpec((tr, hw_p), lambda i: (i, 0)),   # x rows
                pl.BlockSpec((tr, 2), lambda i: (i, 0)),      # fused scale/shift
            ],
            out_specs=pl.BlockSpec((tr, hw_p), lambda i: (i, 0)),
        ),
        compiler_params=pltpu.CompilerParams(
            dimension_semantics=("parallel",),
            vmem_limit_bytes=_vmem_limit(blk_io, intermediates=inter),
        ),
        cost_estimate=pl.CostEstimate(
            flops=int(7 * rows * hw_p),
            transcendentals=int(rows),
            bytes_accessed=int(2 * rows * hw_p * itemsize + rows * 2 * 4),
        ),
    )(x_flat, scale_shift)

    if hw_p != hw:
        out = out[:, :hw]
    return out


def _run_chunked(x_flat, scale_shift, hw, out_dtype,
                 target_elems=_TARGET_BLOCK_ELEMS):
    """Two-pass path for very large spatial planes (bounded VMEM)."""
    rows = x_flat.shape[0]
    itemsize = x_flat.dtype.itemsize
    tr = rows if rows < 8 else 8

    max_chunk = max(128, (target_elems // tr) // 128 * 128)
    n_chunks = pl.cdiv(hw, max_chunk)
    chunk = _round_up(pl.cdiv(hw, n_chunks), 128)
    hw_p = chunk * n_chunks
    if hw_p != hw:
        x_flat = jnp.pad(x_flat, ((0, 0), (0, hw_p - hw)))

    gr = pl.cdiv(rows, tr)
    blk = tr * chunk * itemsize

    # Pass 1: per-row sum and sum-of-squares accumulated over HW chunks.
    sums, ssqs = pl.pallas_call(
        _stats_kernel,
        out_shape=(
            jax.ShapeDtypeStruct((rows, 1), jnp.float32),
            jax.ShapeDtypeStruct((rows, 1), jnp.float32),
        ),
        grid_spec=pltpu.PrefetchScalarGridSpec(
            num_scalar_prefetch=0,
            grid=(gr, n_chunks),
            in_specs=[pl.BlockSpec((tr, chunk), lambda i, j: (i, j))],
            out_specs=(
                pl.BlockSpec((tr, 1), lambda i, j: (i, 0)),
                pl.BlockSpec((tr, 1), lambda i, j: (i, 0)),
            ),
        ),
        compiler_params=pltpu.CompilerParams(
            dimension_semantics=("parallel", "arbitrary"),
            vmem_limit_bytes=_vmem_limit(blk, intermediates=2 * tr * chunk * 4),
        ),
        cost_estimate=pl.CostEstimate(
            flops=int(3 * rows * hw_p),
            transcendentals=0,
            bytes_accessed=int(rows * hw_p * itemsize + 2 * rows * 4),
        ),
    )(x_flat)

    # Host side (tiny): fold mean / rstd / affines into per-row (a, b).
    inv_hw = jnp.float32(1.0 / hw)
    mean = sums * inv_hw
    var = jnp.maximum(ssqs * inv_hw - mean * mean, 0.0)
    rstd = jax.lax.rsqrt(var + EPS)
    a = scale_shift[:, 0:1] * rstd
    b = scale_shift[:, 1:2] - a * mean
    ab = jnp.concatenate([a, b], axis=-1)  # (rows, 2) f32

    # Pass 2: y = a*x + b, streamed chunk by chunk.
    out = pl.pallas_call(
        _apply_kernel,
        out_shape=jax.ShapeDtypeStruct((rows, hw_p), out_dtype),
        grid_spec=pltpu.PrefetchScalarGridSpec(
            num_scalar_prefetch=0,
            grid=(gr, n_chunks),
            in_specs=[
                pl.BlockSpec((tr, chunk), lambda i, j: (i, j)),
                pl.BlockSpec((tr, 2), lambda i, j: (i, 0)),
            ],
            out_specs=pl.BlockSpec((tr, chunk), lambda i, j: (i, j)),
        ),
        compiler_params=pltpu.CompilerParams(
            dimension_semantics=("parallel", "parallel"),
            vmem_limit_bytes=_vmem_limit(2 * blk),
        ),
        cost_estimate=pl.CostEstimate(
            flops=int(2 * rows * hw_p),
            transcendentals=0,
            bytes_accessed=int(2 * rows * hw_p * itemsize + 2 * rows * 4),
        ),
    )(x_flat, ab)

    if hw_p != hw:
        out = out[:, :hw]
    return out


# ---------------------------------------------------------------------------
# Public wrapper
# ---------------------------------------------------------------------------
def custom_instance_norm2d(x, gamma, beta, weight, bias):
    """
    x:      (N, C, H, W)
    gamma:  (N, C, 1, 1)   style scale
    beta:   (N, C, 1, 1)   style shift
    weight: (C,)           InstanceNorm2d affine weight
    bias:   (C,)           InstanceNorm2d affine bias
    """
    n, c, h, w = x.shape
    hw = h * w
    rows = n * c

    x_flat = x.reshape(rows, hw)

    # Fuse the InstanceNorm affine with the style affine:
    #   gamma * (weight * x_hat + bias) + beta
    # = (gamma*weight) * x_hat + (gamma*bias + beta)
    g2 = gamma.reshape(n, c).astype(jnp.float32)
    b2 = beta.reshape(n, c).astype(jnp.float32)
    w1 = weight.reshape(1, c).astype(jnp.float32)
    bi1 = bias.reshape(1, c).astype(jnp.float32)
    scale = (g2 * w1).reshape(rows, 1)
    shift = (g2 * bi1 + b2).reshape(rows, 1)
    scale_shift = jnp.concatenate([scale, shift], axis=-1)  # (rows, 2) f32

    hw_p = _round_up(hw, 128)
    if min(rows, 8) * hw_p > _MAX_BLOCK_ELEMS:
        out_flat = _run_chunked(x_flat, scale_shift, hw, x.dtype)
    else:
        out_flat = _run_fused(x_flat, scale_shift, hw, x.dtype)

    return out_flat.reshape(n, c, h, w)


# ---------------------------------------------------------------------------
# Self-test
# ---------------------------------------------------------------------------
if __name__ == "__main__":
    def reference(x, gamma, beta, weight, bias):
        c = x.shape[1]
        mean = jnp.mean(x, axis=(2, 3), keepdims=True)
        var = jnp.mean((x - mean) ** 2, axis=(2, 3), keepdims=True)
        x_hat = (x - mean) / jnp.sqrt(var + EPS)
        return gamma * (weight.reshape(1, c, 1, 1) * x_hat
                        + bias.reshape(1, c, 1, 1)) + beta

    key = jax.random.PRNGKey(0)
    kx, kg, kb, kw, kbi, kx2 = jax.random.split(key, 6)

    # Primary check: (2, 4, 16, 16) — H*W already a multiple of 128.
    N, C, H, W = 2, 4, 16, 16
    x = jax.random.normal(kx, (N, C, H, W), dtype=jnp.float32)
    gamma = jax.random.normal(kg, (N, C, 1, 1), dtype=jnp.float32)
    beta = jax.random.normal(kb, (N, C, 1, 1), dtype=jnp.float32)
    weight = jax.random.normal(kw, (C,), dtype=jnp.float32)
    bias = jax.random.normal(kbi, (C,), dtype=jnp.float32)

    out = custom_instance_norm2d(x, gamma, beta, weight, bias)
    jax.block_until_ready(out)
    ref = reference(x, gamma, beta, weight, bias)
    assert out.shape == ref.shape
    assert jnp.allclose(out, ref, atol=1e-4, rtol=1e-5), "fused path mismatch"

    # Padding path: H*W = 196 is not a multiple of 128 (padded to 256 + masked
    # out of stats by construction — zero pad contributes nothing).
    x14 = jax.random.normal(kx2, (N, C, 14, 14), dtype=jnp.float32)
    out14 = custom_instance_norm2d(x14, gamma, beta, weight, bias)
    jax.block_until_ready(out14)
    ref14 = reference(x14, gamma, beta, weight, bias)
    assert jnp.allclose(out14, ref14, atol=1e-4, rtol=1e-5), "pad path mismatch"

    # Chunked (large-H*W) path, exercised at small size by lowering the
    # per-block element target so H*W splits into 2 chunks.
    rows = N * C
    x_flat = x.reshape(rows, H * W)
    g2 = gamma.reshape(N, C)
    b2 = beta.reshape(N, C)
    sc = (g2 * weight.reshape(1, C)).reshape(rows, 1)
    sh = (g2 * bias.reshape(1, C) + b2).reshape(rows, 1)
    ss = jnp.concatenate([sc, sh], axis=-1).astype(jnp.float32)
    out_ch = _run_chunked(x_flat, ss, H * W, x.dtype, target_elems=8 * 128)
    jax.block_until_ready(out_ch)
    assert jnp.allclose(out_ch.reshape(N, C, H, W), ref,
                        atol=1e-4, rtol=1e-5), "chunked path mismatch"

    print("KERNEL_OK")
</pallas_src>

<mosaic_0001>
module attributes {stable_mosaic.version = 11 : i64} {
  func.func @_fused_kernel(%arg0: i32, %arg1: memref<8x256xf32, #tpu.memory_space<vmem>>, %arg2: memref<8x2xf32, #tpu.memory_space<vmem>>, %arg3: memref<8x256xf32, #tpu.memory_space<vmem>>) attributes {dimension_semantics = [#tpu.dimension_semantics<parallel>], iteration_bounds = array<i64: 1>, scalar_prefetch = 0 : i64, scratch_operands = 0 : i64, tpu.core_type = #tpu.core_type<tc>, window_params = [{transform_indices = @transform_0, window_bounds = array<i64: 8, 256>}, {transform_indices = @transform_1, window_bounds = array<i64: 8, 2>}, {transform_indices = @transform_2, window_bounds = array<i64: 8, 256>}]} {
    %c0 = arith.constant 0 : index
    %c0_0 = arith.constant 0 : index
    %0 = vector.load %arg1[%c0, %c0_0] : memref<8x256xf32, #tpu.memory_space<vmem>>, vector<8x256xf32>
    %cst = arith.constant dense<0.000000e+00> : vector<8xf32>
    %1 = vector.multi_reduction <add>, %0, %cst [1] : vector<8x256xf32> to vector<8xf32>
    %2 = vector.shape_cast %1 : vector<8xf32> to vector<8x1xf32>
    %3 = arith.mulf %0, %0 : vector<8x256xf32>
    %cst_1 = arith.constant dense<0.000000e+00> : vector<8xf32>
    %4 = vector.multi_reduction <add>, %3, %cst_1 [1] : vector<8x256xf32> to vector<8xf32>
    %5 = vector.shape_cast %4 : vector<8xf32> to vector<8x1xf32>
    %cst_2 = arith.constant 3.906250e-03 : f32
    %6 = vector.broadcast %cst_2 : f32 to vector<8x1xf32>
    %7 = arith.mulf %2, %6 : vector<8x1xf32>
    %cst_3 = arith.constant 3.906250e-03 : f32
    %8 = vector.broadcast %cst_3 : f32 to vector<8x1xf32>
    %9 = arith.mulf %5, %8 : vector<8x1xf32>
    %10 = arith.mulf %7, %7 : vector<8x1xf32>
    %11 = arith.subf %9, %10 : vector<8x1xf32>
    %cst_4 = arith.constant 0.000000e+00 : f32
    %12 = vector.broadcast %cst_4 : f32 to vector<8x1xf32>
    %13 = arith.maximumf %11, %12 : vector<8x1xf32>
    %cst_5 = arith.constant 9.99999974E-6 : f32
    %14 = vector.broadcast %cst_5 : f32 to vector<8x1xf32>
    %15 = arith.addf %13, %14 : vector<8x1xf32>
    %16 = math.rsqrt %15 : vector<8x1xf32>
    %c0_6 = arith.constant 0 : index
    %c0_7 = arith.constant 0 : index
    %17 = vector.load %arg2[%c0_6, %c0_7] : memref<8x2xf32, #tpu.memory_space<vmem>>, vector<8x2xf32>
    %18 = vector.extract_strided_slice %17 {offsets = [0, 0], sizes = [8, 1], strides = [1, 1]} : vector<8x2xf32> to vector<8x1xf32>
    %19 = arith.mulf %18, %16 : vector<8x1xf32>
    %20 = vector.extract_strided_slice %17 {offsets = [0, 1], sizes = [8, 1], strides = [1, 1]} : vector<8x2xf32> to vector<8x1xf32>
    %21 = arith.mulf %19, %7 : vector<8x1xf32>
    %22 = arith.subf %20, %21 : vector<8x1xf32>
    %c0_8 = arith.constant 0 : index
    %c0_9 = arith.constant 0 : index
    %23 = vector.load %arg1[%c0_8, %c0_9] : memref<8x256xf32, #tpu.memory_space<vmem>>, vector<8x256xf32>
    %24 = vector.broadcast %19 : vector<8x1xf32> to vector<8x256xf32>
    %25 = arith.mulf %23, %24 : vector<8x256xf32>
    %26 = vector.broadcast %22 : vector<8x1xf32> to vector<8x256xf32>
    %27 = arith.addf %25, %26 : vector<8x256xf32>
    %c0_10 = arith.constant 0 : index
    %c0_11 = arith.constant 0 : index
    %28 = vector.load %arg3[%c0_10, %c0_11] : memref<8x256xf32, #tpu.memory_space<vmem>>, vector<8x256xf32>
    tpu.vector_store %arg3[%c0_10, %c0_11], %27 {strides = array<i32>} : memref<8x256xf32, #tpu.memory_space<vmem>>, vector<8x256xf32>,
    return
  }
  func.func @transform_0(%arg0: i32) -> (i32, i32) {
    %c0_i32 = arith.constant 0 : i32
    %c0_i32_0 = arith.constant 0 : i32
    return %arg0, %c0_i32 : i32, i32
  }
  func.func @transform_1(%arg0: i32) -> (i32, i32) {
    %c0_i32 = arith.constant 0 : i32
    %c0_i32_0 = arith.constant 0 : i32
    return %arg0, %c0_i32 : i32, i32
  }
  func.func @transform_2(%arg0: i32) -> (i32, i32) {
    %c0_i32 = arith.constant 0 : i32
    %c0_i32_0 = arith.constant 0 : i32
    return %arg0, %c0_i32 : i32, i32
  }
}

</mosaic_0001>

<bundles_post_ra>
// kernel: tpu_custom_call.1
= control target key start
LH: loop header
LB: loop body
LE: loop exit
PB: predicated region body
PF: predicated region fallthrough
CT: control target
= control target key end

     0   :  { %7 = vsyncpa [#allocation3], 0  ;;  %s184_s0 = inlined_call_operand.hbm [shape: f32[8,256], index: 0, kind: input, shape index: {}]   ;;  %s185_s1 = inlined_call_operand.vmem [shape: f32[8,2], index: 1, kind: input, shape index: {}]   ;;  %s186_s2 = inlined_call_operand.hbm [shape: f32[8,256], index: 2, kind: output, shape index: {}]  }
   0x1   :  { %8 = vsyncpa [#allocation4], 0  ;;  %s137_s9 = smov [#allocation2]   ;;  %s89_s13 = scalar_lea.hbm %s184_s0, 256 }
   0x2   :  { %s15_s10 = sshll.u32 %s137_s9, 4  ;;  %p90_p0 = scmp.ne.s32.totalorder %s184_s0, %s89_s13  ;;  %s16_s10 = int_to_ptr.vmem [resolvable:$true] %s15_s10 }
   0x3   :  { %p93_p1 = scmp.lt.u32.totalorder %s89_s13, %s184_s0 }
   0x5   :  { %p95_p2 = pnand %p93_p1, %p90_p0 }
   0x7   :  { %98 = shalt.err (!%p95_p2)
}
   0x8   :  { %s99_s18 = scalar_lea.vmem %s16_s10, 256  ;;  %p104_p4 = scmp.lt.s32.totalorder %s16_s10, %s16_s10 }
   0x9   :  { %p100_p3 = scmp.ne.s32.totalorder %s16_s10, %s99_s18  ;;  %p105_p5 = scmp.lt.s32.totalorder %s99_s18, %s99_s18 }
   0xb   :  { %p106_p6 = por %p105_p5, %p104_p4 }
   0xd   :  { %p107_p7 = pnand %p106_p6, %p100_p3 }
   0xf   :  { %110 = shalt.err (!%p107_p7)
}
  0x10   :  { %18 = dma.hbm_to_vmem [thread:$0]  %s184_s0, 256, %s16_s10, [#allocation3]  }
  0x11   :  { %133 = dma.done.wait [#allocation3], 256  }
  0x12   :  { %134 = vsyncadd [#allocation3], 4294967040  ;;  %v24_v0 = vld [vmem:[#allocation2] sm:$0xff]  ;;  %v25_v1 = vld [vmem:[#allocation2 + $0x8] sm:$0xff]  ;;  %v138_v6 = vmov 0   ;;  %v139_v15 = vmov 1  }
  0x13   :  { %v26_v2 = vadd.f32 %v25_v1, %v24_v0  ;;  %v29_v3 = vmul.f32 %v24_v0, %v24_v0  ;;  %v30_v4 = vmul.f32 %v25_v1, %v25_v1  ;;  %85 = vset.pattern.permute.xlu1 %v138_v6  ;;  %86 = vset.pattern.permute.xlu0 %v139_v15  ;;  %v41_v16 = vld [vmem:[%s185_s1] sm:$0xff]  ;;  %s140_s22 = smov 1   ;;  %s141_s23 = smov [#allocation5]  }
  0x14   :  { %s71_s24 = sshll.u32 %s141_s23, 4  ;;  %s72_s24 = int_to_ptr.vmem [resolvable:$true] %s71_s24 }
  0x15   :  { %27 = vadd.xlane.f32.xlu0 %v26_v2  ;;  %v31_v5 = vadd.f32 %v30_v4, %v29_v3  ;;  %s111_s1 = scalar_lea.vmem %s72_s24, 256  ;;  %p116_p9 = scmp.lt.s32.totalorder %s72_s24, %s72_s24 }
  0x16   :  { %p112_p8 = scmp.ne.s32.totalorder %s72_s24, %s111_s1  ;;  %p117_p10 = scmp.lt.s32.totalorder %s111_s1, %s111_s1 }
  0x18   :  { %p118_p11 = por %p117_p10, %p116_p9 }
  0x19   :  { %32 = vadd.xlane.f32.xlu0 %v31_v5 }
  0x1a   :  { %p119_p12 = pnand %p118_p11, %p112_p8 }
  0xa2   :  { %v28_v7 = vpop.xlane.xlu0 %27 }
  0xa3   :  { %v34_v8 = vmul.f32 0.00390625, %v28_v7 }
  0xa5   :  { %v36_v10 = vmul.f32 %v34_v8, %v34_v8 }
  0xa6   :  { %v33_v9 = vpop.xlane.xlu0 %32 }
  0xa7   :  { %v35_v11 = vmul.f32 0.00390625, %v33_v9 }
  0xa9   :  { %v37_v12 = vsub.f32 %v35_v11, %v36_v10 }
  0xab   :  { %v38_v13 = vmax.f32 %v37_v12, 0.0 }
  0xad   :  { %v39_v14 = vadd.f32 1e-05, %v38_v13 }
  0xaf   :  { %87 = vrsqrt.f32 %v39_v14 }
  0xb9   :  { %v88_v17 = vpop.eup %87 }
  0xba   :  { %v42_v18 = vmul.f32 %v88_v17, %v41_v16 }
  0xbc   :  { %v43_v19 = vmul.f32 %v42_v18, %v34_v8 }
  0xbe   :  { %45 = vrot.lane.b32.xlu1 %v43_v19, %s140_s22 }
  0xc2   :  { %51 = vperm.xlu1 %85, %v42_v18  }
 0x130   :  { %v46_v20 = vpop.permute.xlu1 %45 }
 0x131   :  { %v48_v21 = vsub.f32 %v41_v16, %v46_v20 }
 0x133   :  { %58 = vperm.xlu0 %86, %v48_v21  }
 0x141   :  { %v52_v22 = vpop.permute.xlu1 %51 }
 0x142   :  { %v54_v23 = vmul.f32 %v52_v22, %v24_v0  ;;  %v55_v24 = vmul.f32 %v52_v22, %v25_v1 }
 0x1b2   :  { %v59_v25 = vpop.permute.xlu0 %58 }
 0x1b3   :  { %v61_v26 = vadd.f32 %v59_v25, %v54_v23  ;;  %v62_v27 = vadd.f32 %v59_v25, %v55_v24 }
 0x1b5   :  { %63 = vst [vmem:[#allocation5] sm:$0xff] %v61_v26  ;;  %64 = vst [vmem:[#allocation5 + $0x8] sm:$0xff] %v62_v27 }
 0x1b6   :  { %122 = shalt.err (!%p119_p12)
}
 0x1b7   :  { %s123_s27 = scalar_lea.hbm %s186_s2, 256 }
 0x1b8   :  { %p124_p13 = scmp.ne.s32.totalorder %s186_s2, %s123_s27  ;;  %p127_p0 = scmp.lt.u32.totalorder %s123_s27, %s186_s2 }
 0x1ba   :  { %p129_p1 = pnand %p127_p0, %p124_p13 }
 0x1bc   :  { %132 = shalt.err (!%p129_p1)
}
 0x1bd   :  { %74 = dma.vmem_to_hbm [thread:$0]  %s72_s24, 256, %s186_s2, [#allocation4]  }
 0x1be   :  { %135 = dma.done.wait [#allocation4], 256  }
 0x1bf   :  { %136 = vsyncadd [#allocation4], 4294967040 }
 0x1c0   :  { %78 = vsyncpa [#allocation3], 1 }
 0x1c1   :  { %79 = vsyncpa [#allocation4], 1 }

</bundles_post_ra>
